<compile_context>
chip_gen: v7x
topology: tpu7x:2x2x1
jax: 0.10.0
libtpu: 0.0.40
codegen_flags: <defaults>
</compile_context>

<pallas_src>
import jax
import jax.numpy as jnp
from jax.experimental import pallas as pl
from jax.experimental.pallas import tpu as pltpu


def _round_up(x, m):
    return ((x + m - 1) // m) * m


# ----------------------------- Pallas kernel -------------------------------- #
def _grouped_matmul_bn_prelu_kernel(p_ref, w_ref, scale_ref, shift_ref, alpha_ref,
                                    o_ref, acc_ref):
    # grid = (G, M_tiles, K_tiles); K is last ("arbitrary", carries the accumulator).
    # p_ref:     (1, TM, TK)  bf16 im2col rows of this group / M tile / K tile
    # w_ref:     (1, TK, Cp)  bf16 reshaped conv weight (Cp = o_pg padded to 128)
    # scale/shift/alpha_ref: (1, 1, Cp) f32 folded BN + PReLU params
    # o_ref:     (TM, Cp)     f32 lane-dense output column block for this group
    # acc_ref:   (TM, Cp)     f32 VMEM accumulator
    k = pl.program_id(2)

    @pl.when(k == 0)
    def _():
        acc_ref[...] = jnp.zeros_like(acc_ref)

    # bf16 x bf16 -> f32 accumulation on the MXU.
    acc_ref[...] += jnp.dot(p_ref[0], w_ref[0], preferred_element_type=jnp.float32)

    @pl.when(k == pl.num_programs(2) - 1)
    def _():
        y = acc_ref[...] * scale_ref[0] + shift_ref[0]
        o_ref[...] = jnp.where(y >= 0.0, y, y * alpha_ref[0]).astype(o_ref.dtype)


def _fused_grouped_matmul_bn_prelu(patches, w_gkc, scale, shift, alpha, *,
                                   tm=256, tk_max=512):
    """patches: (G, M, Kg), w_gkc: (G, Kg, o_pg), scale/shift/alpha: (G, o_pg)
    -> (M, G*o_pg) float32."""
    G, M, Kg = patches.shape
    o_pg = w_gkc.shape[2]

    cpad = _round_up(o_pg, 128)               # lane-dense output columns per group
    tm_eff = min(tm, _round_up(M, 8))         # row tile: multiple of 8 sublanes
    Mp = _round_up(M, tm_eff)
    if Kg <= tk_max:                          # single K step: full-dim block allowed
        tk, Kp = Kg, Kg
    else:                                     # tile K (multiple of 128) + pad w/ zeros
        tk = tk_max
        Kp = _round_up(Kg, tk)

    patches = jnp.pad(patches, ((0, 0), (0, Mp - M), (0, Kp - Kg))).astype(jnp.bfloat16)
    w_gkc = jnp.pad(w_gkc, ((0, 0), (0, Kp - Kg), (0, cpad - o_pg))).astype(jnp.bfloat16)

    def _prep(p):
        p = jnp.pad(p.reshape(G, o_pg), ((0, 0), (0, cpad - o_pg)))
        return p.reshape(G, 1, cpad).astype(jnp.float32)

    scale2, shift2, alpha2 = _prep(scale), _prep(shift), _prep(alpha)

    grid = (G, Mp // tm_eff, Kp // tk)
    out = pl.pallas_call(
        _grouped_matmul_bn_prelu_kernel,
        out_shape=jax.ShapeDtypeStruct((Mp, G * cpad), jnp.float32),
        grid_spec=pltpu.PrefetchScalarGridSpec(
            num_scalar_prefetch=0,
            grid=grid,
            in_specs=[
                pl.BlockSpec((1, tm_eff, tk), lambda g, i, k: (g, i, k)),   # patches
                pl.BlockSpec((1, tk, cpad), lambda g, i, k: (g, k, 0)),     # weight
                pl.BlockSpec((1, 1, cpad), lambda g, i, k: (g, 0, 0)),      # BN scale
                pl.BlockSpec((1, 1, cpad), lambda g, i, k: (g, 0, 0)),      # BN shift
                pl.BlockSpec((1, 1, cpad), lambda g, i, k: (g, 0, 0)),      # PReLU slope
            ],
            out_specs=pl.BlockSpec((tm_eff, cpad), lambda g, i, k: (i, g)),
            scratch_shapes=[pltpu.VMEM((tm_eff, cpad), jnp.float32)],
        ),
        compiler_params=pltpu.CompilerParams(
            dimension_semantics=("parallel", "parallel", "arbitrary")),
    )(patches, w_gkc, scale2, shift2, alpha2)

    out = out.reshape(Mp, G, cpad)[:M, :, :o_pg]       # drop M / channel padding
    return out.reshape(M, G * o_pg)


# ------------------------------- glue (JAX) --------------------------------- #
def _im2col_grouped(x, kh, kw, stride, padding, groups):
    """x: (N, C, H, W) -> patches (G, N*OH*OW, (C//G)*kh*kw), plus OH, OW."""
    N, C, H, W = x.shape
    sh, sw = stride
    ph, pw = padding
    c_pg = C // groups
    OH = (H + 2 * ph - kh) // sh + 1
    OW = (W + 2 * pw - kw) // sw + 1

    if (kh, kw) == (1, 1) and (ph, pw) == (0, 0):
        # 1x1 conv: no im2col / padding at all, just a strided slice + transpose.
        p = x[:, :, ::sh, ::sw]                                # (N, C, OH, OW)
        p = p.transpose(0, 2, 3, 1)                            # (N, OH, OW, C)
        p = p.reshape(N, OH, OW, groups, c_pg, 1)
    else:
        xp = jnp.pad(x, ((0, 0), (0, 0), (ph, ph), (pw, pw)))
        cols = []
        for i in range(kh):
            for j in range(kw):
                cols.append(xp[:, :, i:i + sh * OH:sh, j:j + sw * OW:sw])  # (N,C,OH,OW)
        p = jnp.stack(cols, axis=-1)                           # (N, C, OH, OW, kh*kw)
        p = p.transpose(0, 2, 3, 1, 4)                         # (N, OH, OW, C, kh*kw)
        p = p.reshape(N, OH, OW, groups, c_pg, kh * kw)

    p = p.transpose(3, 0, 1, 2, 4, 5)                          # (G, N, OH, OW, c_pg, T)
    return p.reshape(groups, N * OH * OW, c_pg * kh * kw), OH, OW


class ConvBlockPallas:
    """Equivalent of ConvBlock(in_c, out_c, kernel, stride, padding, groups)."""

    def __init__(self, in_c, out_c, kernel=(1, 1), stride=(1, 1), padding=(0, 0),
                 groups=1, key=None):
        assert in_c % groups == 0 and out_c % groups == 0
        if key is None:
            key = jax.random.PRNGKey(0)
        self.in_c, self.out_c = in_c, out_c
        self.kernel, self.stride, self.padding, self.groups = kernel, stride, padding, groups
        kh, kw = kernel
        c_pg = in_c // groups

        k_w, k_g, k_b = jax.random.split(key, 3)
        fan_in = c_pg * kh * kw
        bound = 1.0 / (fan_in ** 0.5)
        # Conv2d weight: (out_c, in_c//groups, kh, kw), no bias.
        self.weight = jax.random.uniform(k_w, (out_c, c_pg, kh, kw),
                                         jnp.float32, -bound, bound)
        # BatchNorm2d params (affine), running stats at PyTorch init values.
        self.gamma = 1.0 + 0.1 * jax.random.normal(k_g, (out_c,), jnp.float32)
        self.beta = 0.1 * jax.random.normal(k_b, (out_c,), jnp.float32)
        self.running_mean = jnp.zeros((out_c,), jnp.float32)
        self.running_var = jnp.ones((out_c,), jnp.float32)
        self.eps = 1e-5
        # PReLU per-channel slope (PyTorch init 0.25).
        self.alpha = jnp.full((out_c,), 0.25, jnp.float32)

    def __call__(self, x):
        # x: (N, in_c, H, W) -> (N, out_c, OH, OW)
        kh, kw = self.kernel
        G = self.groups
        c_pg = self.in_c // G
        o_pg = self.out_c // G
        N = x.shape[0]

        patches, OH, OW = _im2col_grouped(x, kh, kw, self.stride, self.padding, G)

        # Weight -> (G, Kg, o_pg) with K flattened as (c_pg, kh*kw), matching patches.
        w = self.weight.reshape(G, o_pg, c_pg, kh * kw)
        w = w.transpose(0, 2, 3, 1).reshape(G, c_pg * kh * kw, o_pg)

        scale = self.gamma / jnp.sqrt(self.running_var + self.eps)
        shift = self.beta - self.running_mean * scale

        out = _fused_grouped_matmul_bn_prelu(
            patches, w,
            scale.reshape(G, o_pg),
            shift.reshape(G, o_pg),
            self.alpha.reshape(G, o_pg),
        )                                                   # (N*OH*OW, out_c)
        out = out.reshape(N, OH, OW, self.out_c).transpose(0, 3, 1, 2)
        return out


# ------------------------------ reference ----------------------------------- #
def _reference(block, x):
    # Same bf16-operand / f32-accumulation numerics as the kernel.
    y = jax.lax.conv_general_dilated(
        x.astype(jnp.bfloat16), block.weight.astype(jnp.bfloat16),
        window_strides=block.stride,
        padding=[(block.padding[0], block.padding[0]),
                 (block.padding[1], block.padding[1])],
        dimension_numbers=("NCHW", "OIHW", "NCHW"),
        feature_group_count=block.groups,
        preferred_element_type=jnp.float32,
    )
    scale = block.gamma / jnp.sqrt(block.running_var + block.eps)
    shift = block.beta - block.running_mean * scale
    y = y * scale.reshape(1, -1, 1, 1) + shift.reshape(1, -1, 1, 1)
    a = block.alpha.reshape(1, -1, 1, 1)
    return jnp.where(y >= 0.0, y, y * a)


if __name__ == "__main__":
    key = jax.random.PRNGKey(0)
    k_x, k_p = jax.random.split(key)

    # Small ConvBlock: in_c=4, out_c=8, 3x3 conv, stride 1, pad 1, groups=2.
    block = ConvBlockPallas(in_c=4, out_c=8, kernel=(3, 3), stride=(1, 1),
                            padding=(1, 1), groups=2, key=k_p)

    x = jax.random.normal(k_x, (2, 4, 16, 16), jnp.float32)   # NCHW

    out = jax.block_until_ready(block(x))
    ref = jax.block_until_ready(_reference(block, x))

    assert out.shape == ref.shape == (2, 8, 16, 16)
    err = float(jnp.max(jnp.abs(out - ref)))
    assert err < 1e-2, f"mismatch vs reference: max abs err = {err}"

    print("KERNEL_OK")
</pallas_src>

<mosaic_0001>
module attributes {stable_mosaic.version = 11 : i64} {
  func.func @_grouped_matmul_bn_prelu_kernel(%arg0: i32, %arg1: i32, %arg2: i32, %arg3: memref<1x256x18xbf16, #tpu.memory_space<vmem>>, %arg4: memref<1x18x128xbf16, #tpu.memory_space<vmem>>, %arg5: memref<1x1x128xf32, #tpu.memory_space<vmem>>, %arg6: memref<1x1x128xf32, #tpu.memory_space<vmem>>, %arg7: memref<1x1x128xf32, #tpu.memory_space<vmem>>, %arg8: memref<256x128xf32, #tpu.memory_space<vmem>>, %arg9: memref<256x128xf32, #tpu.memory_space<vmem>>) attributes {dimension_semantics = [#tpu.dimension_semantics<parallel>, #tpu.dimension_semantics<parallel>, #tpu.dimension_semantics<arbitrary>], iteration_bounds = array<i64: 2, 2, 1>, scalar_prefetch = 0 : i64, scratch_operands = 1 : i64, tpu.core_type = #tpu.core_type<tc>, window_params = [{transform_indices = @transform_0, window_bounds = array<i64: 1, 256, 18>}, {transform_indices = @transform_1, window_bounds = array<i64: 1, 18, 128>}, {transform_indices = @transform_2, window_bounds = array<i64: 1, 1, 128>}, {transform_indices = @transform_3, window_bounds = array<i64: 1, 1, 128>}, {transform_indices = @transform_4, window_bounds = array<i64: 1, 1, 128>}, {transform_indices = @transform_5, window_bounds = array<i64: 256, 128>}]} {
    %c0_i32 = arith.constant 0 : i32
    %0 = arith.cmpi eq, %arg2, %c0_i32 : i32
    %1 = arith.extui %0 : i1 to i32
    %c0_i32_0 = arith.constant 0 : i32
    %2 = arith.cmpi ne, %1, %c0_i32_0 : i32
    scf.if %2 {
      %cst_12 = arith.constant 0.000000e+00 : f32
      %14 = vector.broadcast %cst_12 : f32 to vector<256x128xf32>
      %c0_13 = arith.constant 0 : index
      %c0_14 = arith.constant 0 : index
      %15 = vector.load %arg9[%c0_13, %c0_14] : memref<256x128xf32, #tpu.memory_space<vmem>>, vector<256x128xf32>
      tpu.vector_store %arg9[%c0_13, %c0_14], %14 {strides = array<i32>} : memref<256x128xf32, #tpu.memory_space<vmem>>, vector<256x128xf32>,
    } else {
    }
    %c0 = arith.constant 0 : index
    %c0_1 = arith.constant 0 : index
    %3 = vector.load %arg9[%c0, %c0_1] : memref<256x128xf32, #tpu.memory_space<vmem>>, vector<256x128xf32>
    %c0_2 = arith.constant 0 : index
    %c0_3 = arith.constant 0 : index
    %c0_4 = arith.constant 0 : index
    %4 = vector.load %arg3[%c0_2, %c0_3, %c0_4] : memref<1x256x18xbf16, #tpu.memory_space<vmem>>, vector<1x256x18xbf16>
    %5 = vector.shape_cast %4 : vector<1x256x18xbf16> to vector<256x18xbf16>
    %c0_5 = arith.constant 0 : index
    %c0_6 = arith.constant 0 : index
    %c0_7 = arith.constant 0 : index
    %6 = vector.load %arg4[%c0_5, %c0_6, %c0_7] : memref<1x18x128xbf16, #tpu.memory_space<vmem>>, vector<1x18x128xbf16>
    %7 = vector.shape_cast %6 : vector<1x18x128xbf16> to vector<18x128xbf16>
    %cst = arith.constant dense<0.000000e+00> : vector<256x128xf32>
    %8 = tpu.matmul %5, %7, %cst {dimension_numbers = #tpu.dot_dimension_numbers<[1], [0], [0], [1], [0, 0, 1, 1], [], []>} : vector<256x18xbf16>, vector<18x128xbf16>, vector<256x128xf32> -> vector<256x128xf32>
    %9 = arith.addf %3, %8 : vector<256x128xf32>
    %c0_8 = arith.constant 0 : index
    %c0_9 = arith.constant 0 : index
    %10 = vector.load %arg9[%c0_8, %c0_9] : memref<256x128xf32, #tpu.memory_space<vmem>>, vector<256x128xf32>
    tpu.vector_store %arg9[%c0_8, %c0_9], %9 {strides = array<i32>} : memref<256x128xf32, #tpu.memory_space<vmem>>, vector<256x128xf32>,
    %c0_i32_10 = arith.constant 0 : i32
    %11 = arith.cmpi eq, %arg2, %c0_i32_10 : i32
    %12 = arith.extui %11 : i1 to i32
    %c0_i32_11 = arith.constant 0 : i32
    %13 = arith.cmpi ne, %12, %c0_i32_11 : i32
    scf.if %13 {
      %c0_12 = arith.constant 0 : index
      %c0_13 = arith.constant 0 : index
      %14 = vector.load %arg9[%c0_12, %c0_13] : memref<256x128xf32, #tpu.memory_space<vmem>>, vector<256x128xf32>
      %c0_14 = arith.constant 0 : index
      %c0_15 = arith.constant 0 : index
      %c0_16 = arith.constant 0 : index
      %15 = vector.load %arg5[%c0_14, %c0_15, %c0_16] : memref<1x1x128xf32, #tpu.memory_space<vmem>>, vector<1x1x128xf32>
      %16 = vector.shape_cast %15 : vector<1x1x128xf32> to vector<1x128xf32>
      %17 = vector.broadcast %16 : vector<1x128xf32> to vector<256x128xf32>
      %18 = arith.mulf %14, %17 : vector<256x128xf32>
      %c0_17 = arith.constant 0 : index
      %c0_18 = arith.constant 0 : index
      %c0_19 = arith.constant 0 : index
      %19 = vector.load %arg6[%c0_17, %c0_18, %c0_19] : memref<1x1x128xf32, #tpu.memory_space<vmem>>, vector<1x1x128xf32>
      %20 = vector.shape_cast %19 : vector<1x1x128xf32> to vector<1x128xf32>
      %21 = vector.broadcast %20 : vector<1x128xf32> to vector<256x128xf32>
      %22 = arith.addf %18, %21 : vector<256x128xf32>
      %cst_20 = arith.constant 0.000000e+00 : f32
      %23 = vector.broadcast %cst_20 : f32 to vector<256x128xf32>
      %24 = arith.cmpf oge, %22, %23 : vector<256x128xf32>
      %c0_21 = arith.constant 0 : index
      %c0_22 = arith.constant 0 : index
      %c0_23 = arith.constant 0 : index
      %25 = vector.load %arg7[%c0_21, %c0_22, %c0_23] : memref<1x1x128xf32, #tpu.memory_space<vmem>>, vector<1x1x128xf32>
      %26 = vector.shape_cast %25 : vector<1x1x128xf32> to vector<1x128xf32>
      %27 = vector.broadcast %26 : vector<1x128xf32> to vector<256x128xf32>
      %28 = arith.mulf %22, %27 : vector<256x128xf32>
      %29 = arith.select %24, %22, %28 : vector<256x128xi1>, vector<256x128xf32>
      %c0_24 = arith.constant 0 : index
      %c0_25 = arith.constant 0 : index
      %30 = vector.load %arg8[%c0_24, %c0_25] : memref<256x128xf32, #tpu.memory_space<vmem>>, vector<256x128xf32>
      tpu.vector_store %arg8[%c0_24, %c0_25], %29 {strides = array<i32>} : memref<256x128xf32, #tpu.memory_space<vmem>>, vector<256x128xf32>,
    } else {
    }
    return
  }
  func.func @transform_0(%arg0: i32, %arg1: i32, %arg2: i32) -> (i32, i32, i32) {
    %c0_i32 = arith.constant 0 : i32
    return %arg0, %arg1, %arg2 : i32, i32, i32
  }
  func.func @transform_1(%arg0: i32, %arg1: i32, %arg2: i32) -> (i32, i32, i32) {
    %c0_i32 = arith.constant 0 : i32
    %c0_i32_0 = arith.constant 0 : i32
    return %arg0, %arg2, %c0_i32 : i32, i32, i32
  }
  func.func @transform_2(%arg0: i32, %arg1: i32, %arg2: i32) -> (i32, i32, i32) {
    %c0_i32 = arith.constant 0 : i32
    %c0_i32_0 = arith.constant 0 : i32
    %c0_i32_1 = arith.constant 0 : i32
    return %arg0, %c0_i32, %c0_i32_0 : i32, i32, i32
  }
  func.func @transform_3(%arg0: i32, %arg1: i32, %arg2: i32) -> (i32, i32, i32) {
    %c0_i32 = arith.constant 0 : i32
    %c0_i32_0 = arith.constant 0 : i32
    %c0_i32_1 = arith.constant 0 : i32
    return %arg0, %c0_i32, %c0_i32_0 : i32, i32, i32
  }
  func.func @transform_4(%arg0: i32, %arg1: i32, %arg2: i32) -> (i32, i32, i32) {
    %c0_i32 = arith.constant 0 : i32
    %c0_i32_0 = arith.constant 0 : i32
    %c0_i32_1 = arith.constant 0 : i32
    return %arg0, %c0_i32, %c0_i32_0 : i32, i32, i32
  }
  func.func @transform_5(%arg0: i32, %arg1: i32, %arg2: i32) -> (i32, i32) {
    %c0_i32 = arith.constant 0 : i32
    return %arg1, %arg0 : i32, i32
  }
}

</mosaic_0001>

<bundles_post_ra>
// kernel: tpu_custom_call.1
= control target key start
LH: loop header
LB: loop body
LE: loop exit
PB: predicated region body
PF: predicated region fallthrough
CT: control target
= control target key end

     0   :  { %10 = vsyncpa [#allocation4], 0  ;;  %s1890_s0 = inlined_call_operand.vmem [shape: bf16[2,512,18], index: 0, kind: input, shape index: {}]   ;;  %s1891_s1 = inlined_call_operand.vmem [shape: bf16[2,18,128], index: 1, kind: input, shape index: {}]   ;;  %s1892_s2 = inlined_call_operand.vmem [shape: f32[2,1,128], index: 2, kind: input, shape index: {}]   ;;  %s1893_s3 = inlined_call_operand.vmem [shape: f32[2,1,128], index: 3, kind: input, shape index: {}]   ;;  %s1894_s4 = inlined_call_operand.vmem [shape: f32[2,1,128], index: 4, kind: input, shape index: {}]   ;;  %s1895_s5 = inlined_call_operand.hbm [shape: f32[512,256], index: 5, kind: output, shape index: {}]  }
   0x1   :  { %12 = vsyncpa [#allocation4 + $0x1], 0  ;;  %s1554_s18 = smov 0   ;;  %s1556_s19 = smov 0  }
   0x2   :  { %s1558_s20 = smov 0   ;;  %s1560_s21 = smov 0  }
   0x3   :  { %s1562_s22 = smov 0   ;;  %s1564_s23 = smov 0  }
   0x4   :  { %s1566_s24 = smov 0   ;;  %s1568_s25 = smov 0  }
   0x5 LB: > { %s1217_s26 = sadd.s32 4294967295, %s1518_s25   ;;  %s1218_s27 = sadd.s32 4294967294, %s1518_s25   ;;  %s1518_s25 = sphi %s1568_s25, %s18_s25   ;;  %s1514_s24 = sphi %s1566_s24, %s1904_s24   ;;  %s1510_s23 = sphi %s1564_s23, %s1903_s23   ;;  %s1506_s22 = sphi %s1562_s22, %s1902_s22   ;;  %s1502_s21 = sphi %s1560_s21, %s1901_s21   ;;  %s1498_s20 = sphi %s1558_s20, %s1900_s20   ;;  %s1494_s19 = sphi %s1556_s19, %s1899_s19   ;;  %s1490_s18 = sphi %s1554_s18, %s1898_s18  }
   0x6   : > { %s33_s28 = sadd.s32 1, %s1510_s23  ;;  %s37_s29 = sadd.s32 1, %s1514_s24 }
   0x7   : > { %p35_p0 = scmp.ge.s32.totalorder %s33_s28, 2  ;;  %p192_p1 = scmp.ne.s32.totalorder %s1498_s20, %s1494_s19 }
   0x8   : > { %p193_p2 = scmp.eq.s32.totalorder %s1217_s26, 3  ;;  %p198_p5 = scmp.ne.s32.totalorder %s1494_s19, %s1490_s18 }
   0x9   : > { %s1906_s28 = smov (%p35_p0, %s33_s28), 0  ;;  %s1908_s29 = smov (!%p35_p0, %s37_s29), %s1514_s24 }
   0xa   : > { %s177_s30 = ssub.s32 %s1510_s23, %s1906_s28  ;;  %p1605_p3 = por %p193_p2, %p192_p1 }
   0xb   : > { %p39_p4 = scmp.ge.s32.totalorder %s1908_s29, 2  ;;  %p199_p6 = scmp.eq.s32.totalorder %s1218_s27, 3 }
   0xc   : > { %p1221_p7 = scmp.ge.s32.totalorder %s1518_s25, 1  ;;  %p264_p9 = scmp.lt.s32.totalorder %s1518_s25, 5 }
   0xd   : > { %s1910_s29 = smov (%p39_p4, %s1908_s29), 0  ;;  %p1614_p8 = por %p199_p6, %p198_p5 }
   0xe   : > { %s178_s8 = ssub.s32 %s1514_s24, %s1910_s29  ;;  %s182_s9 = sadd.s32 1, %s1498_s20 }
   0xf   : > { %s179_s10 = sor.u32 %s178_s8, %s177_s30  ;;  %p265_p10 = pnand %p1221_p7, %p264_p9 }
  0x10   : > { %p180_p11 = scmp.eq.s32.totalorder %s179_s10, 0  ;;  %s1223_s12 = sshll.u32 (!%p265_p10), %s1502_s21, 5  ;;  %vm592_vm0 = vcmask (!%p265_p10), 1040384   ;;  %vm543_vm1 = vcmask (!%p265_p10), 146432  }
  0x11   : > { %268 = sbr.rel (%p265_p10) target bundleno = 310 (0x136), region = 40  ;;  %p318_p12 = scmp.lt.s32.totalorder (!%p265_p10), %s1506_s22, 1 }
  0x12   : > { %s1623_s11 = scalar_select %p180_p11, %s1498_s20, %s182_s9  }
  0x13   : > { %p320_p13 = scmp.lt.s32.totalorder (!%p265_p10), %s1223_s12, 63  ;;  %s314_s9 = sand.u32 (!%p265_p10), 1, %s1494_s19  }
  0x18   : > { %s1628_s13 = scalar_select %p318_p12, %s1506_s22, 1 }
  0x19   : > { %s1912_s12 = smov (!%p320_p13, %s1223_s12), 63 }
  0x1a   : > { %s1224_s14 = sshll.u32 %s1628_s13, 6  ;;  %s1331_s15 = smul.u32 12, %s1628_s13 }
  0x1b   : > { %s326_s16 = sadd.s32 %s1224_s14, %s1912_s12  ;;  %s345_s26 = scalar_lea.vmem %s1893_s3, %s1628_s13 }
  0x1c   : > { %s1225_s17 = sshll.u32 %s326_s16, 2  ;;  %s338_s30 = scalar_lea.vmem %s1891_s1, %s1331_s15  ;;  %v1687_v20 = vld [vmem:[%s345_s26] ss:$0 sm:$0xff] }
  0x1d   : > { %s1638_s10 = scalar_lea.vmem %s1890_s0, %s1225_s17  ;;  %v1406_v0 = vld [vmem:[%s338_s30] sm:$0xff]   ;;  %v1407_v1 = vld [vmem:[%s338_s30 + $0x8] ss:$0 sps:$4 sm:$0x11]   ;;  %s342_s15 = scalar_lea.vmem %s1892_s2, %s1628_s13 }
  0x1e   : > { %1289 = vmatprep.subr.bf16.mxu0 %v1406_v0  ;;  %1325 = vmatprep.subr.bf16.mxu1 %v1406_v0  ;;  %v1408_v2 = vld [vmem:[%s1638_s10] sm:$0xff]   ;;  %v594_v3 = vsel %vm592_vm0, %v1407_v1, 0  ;;  %v1410_v5 = vld [vmem:[%s1638_s10 + $0x8] sm:$0xff]   ;;  %v1412_v7 = vld [vmem:[%s1638_s10 + $0x10] sm:$0xff]   ;;  %s348_s8 = scalar_lea.vmem %s1894_s4, %s1628_s13  ;;  %s1270_s12 = sshll.u32 %s1502_s21, 6 }
  0x1f   : > { %1290 = vmatpush3.bf16.msra.mxu0 %v1406_v0  ;;  %1327 = vmatpush3.bf16.msra.mxu1 %v1406_v0  ;;  %v1409_v4 = vld [vmem:[%s1638_s10 + $0x40] sm:$0xff]   ;;  %v1411_v6 = vld [vmem:[%s1638_s10 + $0x48] sm:$0xff]   ;;  %v1413_v8 = vld [vmem:[%s1638_s10 + $0x50] sm:$0xff]   ;;  %s1801_s21 = sadd.s32 %s1506_s22, %s1270_s12  ;;  %s1838_s26 = scalar_lea.sflag [#allocation4], %s314_s9 }
  0x20   : > { %1329 = vmatprep.subr.msk.bf16.mxu0 %vm592_vm0, %v1407_v1  ;;  %1330 = vmatprep.subr.msk.bf16.mxu1 %vm592_vm0, %v1407_v1  ;;  %v1414_v9 = vld [vmem:[%s1638_s10 + $0x18] sm:$0xff]   ;;  %v1416_v11 = vld [vmem:[%s1638_s10 + $0x20] sm:$0xff]   ;;  %v1418_v13 = vld [vmem:[%s1638_s10 + $0x28] sm:$0xff]   ;;  %s1267_s22 = sshll.u32 %s1801_s21, 7  ;;  %s1520_s30 = smov [#allocation3]  }
  0x21   : > { %1293 = vmatprep.mubr.msk.bf16.mxu0 %vm543_vm1, %v1408_v2  ;;  %1309 = vmatprep.mubr.msk.bf16.mxu1 %vm543_vm1, %v1409_v4  ;;  %v1415_v10 = vld [vmem:[%s1638_s10 + $0x58] sm:$0xff]   ;;  %v1417_v12 = vld [vmem:[%s1638_s10 + $0x60] sm:$0xff]   ;;  %v1419_v14 = vld [vmem:[%s1638_s10 + $0x68] sm:$0xff]   ;;  %s1826_s17 = scalar_lea.hbm %s1895_s5, %s1267_s22 }
  0x22   : > { %v1420_v15 = vld [vmem:[%s1638_s10 + $0x30] sm:$0xff]   ;;  %v1422_v17 = vld [vmem:[%s1638_s10 + $0x38] sm:$0xff]   ;;  %v1680_v19 = vld [vmem:[%s342_s15] ss:$0 sm:$0xff] }
  0x23   : > { %1292 = vmatpush3.bf16.msra.mxu0 %v594_v3  ;;  %1328 = vmatpush3.bf16.msra.mxu1 %v594_v3  ;;  %v1421_v16 = vld [vmem:[%s1638_s10 + $0x70] sm:$0xff]   ;;  %v1423_v18 = vld [vmem:[%s1638_s10 + $0x78] sm:$0xff]   ;;  %v1691_v27 = vld [vmem:[%s348_s8] ss:$0 sm:$0xff]  ;;  %s1222_s10 = sshll.u32 %s314_s9, 8  ;;  %s1428_s8 = sshll.u32 %s1520_s30, 4  ;;  %s1429_s8 = int_to_ptr.vmem [resolvable:$false] %s1428_s8 }
  0x24   : > { %s1711_s13 = scalar_lea.vmem [#allocation3], %s1222_s10  ;;  %s1430_s10 = scalar_lea.vmem %s1429_s8, 8192 }
  0x25   : > { %s1085_s14 = sshll.u32 %s1711_s13, 4  ;;  %s1830_s14 = int_to_ptr.vmem [resolvable:$true] %s1085_s14 }
  0x26   : > { %1294 = vmatmul.mubr.msk.bf16.vlgmr.msra.gmra.mrb[0].mxu0 %vm543_vm1, %v1410_v5  ;;  %1310 = vmatmul.mubr.msk.bf16.vlgmr.msra.gmra.mrb[0].mxu1 %vm543_vm1, %v1411_v6  ;;  %s1424_s27 = scalar_lea.vmem %s1830_s14, 4096  ;;  %p1431_p4 = scmp.lt.s32.totalorder %s1830_s14, %s1429_s8 }
  0x27   : > { %1297 = vmatprep.mubr.msk.bf16.mxu0 %vm543_vm1, %v1412_v7  ;;  %1313 = vmatprep.mubr.msk.bf16.mxu1 %vm543_vm1, %v1413_v8  ;;  %p1425_p0 = scmp.ne.s32.totalorder %s1830_s14, %s1424_s27  ;;  %p1432_p5 = scmp.lt.s32.totalorder %s1430_s10, %s1424_s27 }
  0x29   : > { %p1426_p1 = pnand %p1425_p0, %p1605_p3  ;;  %p1433_p6 = por %p1432_p5, %p1431_p4 }
  0x2b   : > { %p1427_p2 = pneg %p1426_p1 }
  0x2d   : > { %p1434_p7 = pnand %p1433_p6, %p1427_p2 }
  0x2e   : > { %1298 = vmatmul.mubr.msk.bf16.gmra.mrb[4].mxu0 %vm543_vm1, %v1414_v9  ;;  %1314 = vmatmul.mubr.msk.bf16.gmra.mrb[4].mxu1 %vm543_vm1, %v1415_v10 }
  0x2f   : > { %1301 = vmatprep.mubr.msk.bf16.mxu0 %vm543_vm1, %v1416_v11  ;;  %1317 = vmatprep.mubr.msk.bf16.mxu1 %vm543_vm1, %v1417_v12 }
  0x36   : > { %1302 = vmatmul.mubr.msk.bf16.gmra.mrb[8].mxu0 %vm543_vm1, %v1418_v13  ;;  %1318 = vmatmul.mubr.msk.bf16.gmra.mrb[8].mxu1 %vm543_vm1, %v1419_v14 }
  0x37   : > { %1305 = vmatprep.mubr.msk.bf16.mxu0 %vm543_vm1, %v1420_v15  ;;  %1321 = vmatprep.mubr.msk.bf16.mxu1 %vm543_vm1, %v1421_v16 }
  0x3e   : > { %1306 = vmatmul.mubr.msk.bf16.gmra.mrb[12].mxu0 %vm543_vm1, %v1422_v17  ;;  %1322 = vmatmul.mubr.msk.bf16.gmra.mrb[12].mxu1 %vm543_vm1, %v1423_v18 }
  0xf9   : > { %v1295_v21 = vpop.f32.mrb[0].mxu0  ;;  %v1311_v22 = vpop.f32.mrb[0].mxu1 }
  0xfa   : > { %v865_v23 = vmul.f32 %v1295_v21, %v1680_v19  ;;  %v881_v24 = vmul.f32 %v1311_v22, %v1680_v19  ;;  %v630_v25 = vpop.f32.mrb[1].mxu0  ;;  %v694_v26 = vpop.f32.mrb[1].mxu1 }
  0xfb   : > { %v863_v28 = vmul.f32 %v1680_v19, %v630_v25  ;;  %v879_v29 = vmul.f32 %v1680_v19, %v694_v26  ;;  %v1296_v30 = vpop.f32.mrb[2].mxu0  ;;  %v1312_v31 = vpop.f32.mrb[2].mxu1 }
  0xfc   : > { %v904_v32 = vadd.f32 %v1687_v20, %v865_v23  ;;  %v920_v33 = vadd.f32 %v1687_v20, %v881_v24  ;;  %v866_v34 = vmul.f32 %v1296_v30, %v1680_v19  ;;  %v882_v35 = vmul.f32 %v1312_v31, %v1680_v19  ;;  %v633_v36 = vpop.f32.mrb[3].mxu0  ;;  %v697_v37 = vpop.f32.mrb[3].mxu1 }
  0xfd   : > { %v902_v38 = vadd.f32 %v1687_v20, %v863_v28  ;;  %v918_v39 = vadd.f32 %v1687_v20, %v879_v29  ;;  %v864_v40 = vmul.f32 %v1680_v19, %v633_v36  ;;  %v880_v41 = vmul.f32 %v1680_v19, %v697_v37 }
  0xfe   : > { %vm936_vm2 = vcmp.ge.f32.partialorder %v904_v32, 0.0  ;;  %v975_v42 = vmul.f32 %v1691_v27, %v904_v32  ;;  %vm952_vm3 = vcmp.ge.f32.partialorder %v920_v33, 0.0  ;;  %v991_v43 = vmul.f32 %v1691_v27, %v920_v33 }
  0xff   : > { %vm934_vm4 = vcmp.ge.f32.partialorder %v902_v38, 0.0  ;;  %v973_v44 = vmul.f32 %v1691_v27, %v902_v38  ;;  %vm950_vm5 = vcmp.ge.f32.partialorder %v918_v39, 0.0  ;;  %v989_v45 = vmul.f32 %v1691_v27, %v918_v39 }
 0x100   : > { %v1007_v46 = vsel %vm936_vm2, %v904_v32, %v975_v42  ;;  %v1023_v47 = vsel %vm952_vm3, %v920_v33, %v991_v43  ;;  %v905_v48 = vadd.f32 %v1687_v20, %v866_v34  ;;  %v921_v49 = vadd.f32 %v1687_v20, %v882_v35 }
 0x101   : > { %1039 = vst [vmem:[%s1711_s13 + $0x10] sm:$0xff] %v1007_v46  ;;  %1055 = vst [vmem:[%s1711_s13 + $0x90] sm:$0xff] %v1023_v47  ;;  %v1005_v50 = vsel %vm934_vm4, %v902_v38, %v973_v44  ;;  %v1021_v51 = vsel %vm950_vm5, %v918_v39, %v989_v45  ;;  %v903_v52 = vadd.f32 %v1687_v20, %v864_v40  ;;  %v1299_v54 = vpop.f32.mrb[4].mxu0  ;;  %v1315_v55 = vpop.f32.mrb[4].mxu1 }
 0x102   : > { %v919_v53 = vadd.f32 %v1687_v20, %v880_v41  ;;  %1037 = vst [vmem:[%s1711_s13] sm:$0xff] %v1005_v50  ;;  %1053 = vst [vmem:[%s1711_s13 + $0x80] sm:$0xff] %v1021_v51  ;;  %vm937_vm6 = vcmp.ge.f32.partialorder %v905_v48, 0.0  ;;  %v976_v56 = vmul.f32 %v1691_v27, %v905_v48  ;;  %vm953_vm7 = vcmp.ge.f32.partialorder %v921_v49, 0.0  ;;  %v646_v58 = vpop.f32.mrb[5].mxu0  ;;  %v710_v59 = vpop.f32.mrb[5].mxu1 }
 0x103   : > { %v992_v57 = vmul.f32 %v1691_v27, %v921_v49  ;;  %vm935_vm8 = vcmp.ge.f32.partialorder %v903_v52, 0.0  ;;  %v974_v60 = vmul.f32 %v1691_v27, %v903_v52  ;;  %v1300_v62 = vpop.f32.mrb[6].mxu0  ;;  %v1316_v63 = vpop.f32.mrb[6].mxu1  ;;  %v869_v2 = vmul.f32 %v1299_v54, %v1680_v19 }
 0x104   : > { %vm951_vm9 = vcmp.ge.f32.partialorder %v919_v53, 0.0  ;;  %v990_v61 = vmul.f32 %v1691_v27, %v919_v53  ;;  %v1008_v0 = vsel %vm937_vm6, %v905_v48, %v976_v56  ;;  %v885_v3 = vmul.f32 %v1315_v55, %v1680_v19  ;;  %v649_v4 = vpop.f32.mrb[7].mxu0  ;;  %v713_v5 = vpop.f32.mrb[7].mxu1 }
 0x105   : > { %v1024_v1 = vsel %vm953_vm7, %v921_v49, %v992_v57  ;;  %1040 = vst [vmem:[%s1711_s13 + $0x18] sm:$0xff] %v1008_v0  ;;  %v1006_v6 = vsel %vm935_vm8, %v903_v52, %v974_v60  ;;  %v867_v8 = vmul.f32 %v1680_v19, %v646_v58  ;;  %v883_v9 = vmul.f32 %v1680_v19, %v710_v59 }
 0x106   : > { %1056 = vst [vmem:[%s1711_s13 + $0x98] sm:$0xff] %v1024_v1  ;;  %v1022_v7 = vsel %vm951_vm9, %v919_v53, %v990_v61  ;;  %1038 = vst [vmem:[%s1711_s13 + $0x8] sm:$0xff] %v1006_v6  ;;  %v908_v10 = vadd.f32 %v1687_v20, %v869_v2  ;;  %v924_v11 = vadd.f32 %v1687_v20, %v885_v3 }
 0x107   : > { %1054 = vst [vmem:[%s1711_s13 + $0x88] sm:$0xff] %v1022_v7  ;;  %v870_v12 = vmul.f32 %v1300_v62, %v1680_v19  ;;  %v886_v13 = vmul.f32 %v1316_v63, %v1680_v19  ;;  %v906_v14 = vadd.f32 %v1687_v20, %v867_v8  ;;  %v922_v15 = vadd.f32 %v1687_v20, %v883_v9 }
 0x108   : > { %v868_v16 = vmul.f32 %v1680_v19, %v649_v4  ;;  %v884_v17 = vmul.f32 %v1680_v19, %v713_v5  ;;  %vm940_vm10 = vcmp.ge.f32.partialorder %v908_v10, 0.0  ;;  %v979_v18 = vmul.f32 %v1691_v27, %v908_v10 }
 0x109   : > { %vm956_vm11 = vcmp.ge.f32.partialorder %v924_v11, 0.0  ;;  %v995_v21 = vmul.f32 %v1691_v27, %v924_v11  ;;  %vm938_vm12 = vcmp.ge.f32.partialorder %v906_v14, 0.0  ;;  %v977_v22 = vmul.f32 %v1691_v27, %v906_v14  ;;  %v1303_v24 = vpop.f32.mrb[8].mxu0  ;;  %v1319_v25 = vpop.f32.mrb[8].mxu1 }
 0x10a   : > { %vm954_vm13 = vcmp.ge.f32.partialorder %v922_v15, 0.0  ;;  %v993_v23 = vmul.f32 %v1691_v27, %v922_v15  ;;  %v1011_v26 = vsel %vm940_vm10, %v908_v10, %v979_v18  ;;  %v909_v29 = vadd.f32 %v1687_v20, %v870_v12  ;;  %v662_v31 = vpop.f32.mrb[9].mxu0  ;;  %v726_v32 = vpop.f32.mrb[9].mxu1 }
 0x10b   : > { %v1027_v28 = vsel %vm956_vm11, %v924_v11, %v995_v21  ;;  %v925_v30 = vadd.f32 %v1687_v20, %v886_v13  ;;  %1043 = vst [vmem:[%s1711_s13 + $0x30] sm:$0xff] %v1011_v26  ;;  %v1009_v33 = vsel %vm938_vm12, %v906_v14, %v977_v22  ;;  %v907_v35 = vadd.f32 %v1687_v20, %v868_v16  ;;  %v1304_v37 = vpop.f32.mrb[10].mxu0  ;;  %v1320_v38 = vpop.f32.mrb[10].mxu1 }
 0x10c   : > { %1059 = vst [vmem:[%s1711_s13 + $0xb0] sm:$0xff] %v1027_v28  ;;  %v1025_v34 = vsel %vm954_vm13, %v922_v15, %v993_v23  ;;  %v923_v36 = vadd.f32 %v1687_v20, %v884_v17  ;;  %1041 = vst [vmem:[%s1711_s13 + $0x20] sm:$0xff] %v1009_v33  ;;  %vm941_vm14 = vcmp.ge.f32.partialorder %v909_v29, 0.0  ;;  %v980_v39 = vmul.f32 %v1691_v27, %v909_v29  ;;  %v665_v41 = vpop.f32.mrb[11].mxu0  ;;  %v729_v42 = vpop.f32.mrb[11].mxu1 }
 0x10d   : > { %1057 = vst [vmem:[%s1711_s13 + $0xa0] sm:$0xff] %v1025_v34  ;;  %vm957_vm15 = vcmp.ge.f32.partialorder %v925_v30, 0.0  ;;  %v996_v40 = vmul.f32 %v1691_v27, %v925_v30  ;;  %vm939_vm0 = vcmp.ge.f32.partialorder %v907_v35, 0.0  ;;  %v978_v43 = vmul.f32 %v1691_v27, %v907_v35 }
 0x10e   : > { %vm955_vm1 = vcmp.ge.f32.partialorder %v923_v36, 0.0  ;;  %v994_v44 = vmul.f32 %v1691_v27, %v923_v36  ;;  %v1012_v45 = vsel %vm941_vm14, %v909_v29, %v980_v39  ;;  %v873_v47 = vmul.f32 %v1303_v24, %v1680_v19 }
 0x10f   : > { %v1028_v46 = vsel %vm957_vm15, %v925_v30, %v996_v40  ;;  %v889_v48 = vmul.f32 %v1319_v25, %v1680_v19  ;;  %1044 = vst [vmem:[%s1711_s13 + $0x38] sm:$0xff] %v1012_v45  ;;  %v1010_v49 = vsel %vm939_vm0, %v907_v35, %v978_v43  ;;  %v871_v51 = vmul.f32 %v1680_v19, %v662_v31 }
 0x110   : > { %1060 = vst [vmem:[%s1711_s13 + $0xb8] sm:$0xff] %v1028_v46  ;;  %v1026_v50 = vsel %vm955_vm1, %v923_v36, %v994_v44  ;;  %v887_v52 = vmul.f32 %v1680_v19, %v726_v32  ;;  %1042 = vst [vmem:[%s1711_s13 + $0x28] sm:$0xff] %v1010_v49  ;;  %v912_v53 = vadd.f32 %v1687_v20, %v873_v47 }
 0x111   : > { %1058 = vst [vmem:[%s1711_s13 + $0xa8] sm:$0xff] %v1026_v50  ;;  %v928_v54 = vadd.f32 %v1687_v20, %v889_v48  ;;  %v874_v55 = vmul.f32 %v1304_v37, %v1680_v19  ;;  %v890_v56 = vmul.f32 %v1320_v38, %v1680_v19  ;;  %v910_v57 = vadd.f32 %v1687_v20, %v871_v51  ;;  %v1307_v61 = vpop.f32.mrb[12].mxu0  ;;  %v1323_v62 = vpop.f32.mrb[12].mxu1 }
 0x112   : > { %v926_v58 = vadd.f32 %v1687_v20, %v887_v52  ;;  %v872_v59 = vmul.f32 %v1680_v19, %v665_v41  ;;  %v888_v60 = vmul.f32 %v1680_v19, %v729_v42  ;;  %vm944_vm2 = vcmp.ge.f32.partialorder %v912_v53, 0.0  ;;  %v678_v1 = vpop.f32.mrb[13].mxu0  ;;  %v742_v2 = vpop.f32.mrb[13].mxu1 }
 0x113   : > { %v983_v63 = vmul.f32 %v1691_v27, %v912_v53  ;;  %vm960_vm3 = vcmp.ge.f32.partialorder %v928_v54, 0.0  ;;  %v999_v0 = vmul.f32 %v1691_v27, %v928_v54  ;;  %vm942_vm4 = vcmp.ge.f32.partialorder %v910_v57, 0.0  ;;  %v1308_v5 = vpop.f32.mrb[14].mxu0  ;;  %v1324_v6 = vpop.f32.mrb[14].mxu1 }
 0x114   : > { %v981_v3 = vmul.f32 %v1691_v27, %v910_v57  ;;  %vm958_vm5 = vcmp.ge.f32.partialorder %v926_v58, 0.0  ;;  %v997_v4 = vmul.f32 %v1691_v27, %v926_v58  ;;  %v913_v9 = vadd.f32 %v1687_v20, %v874_v55  ;;  %v681_v11 = vpop.f32.mrb[15].mxu0  ;;  %v745_v12 = vpop.f32.mrb[15].mxu1 }
 0x115   : > { %v1015_v7 = vsel %vm944_vm2, %v912_v53, %v983_v63  ;;  %v1031_v8 = vsel %vm960_vm3, %v928_v54, %v999_v0  ;;  %v929_v10 = vadd.f32 %v1687_v20, %v890_v56  ;;  %v911_v15 = vadd.f32 %v1687_v20, %v872_v59 }
 0x116   : > { %1047 = vst [vmem:[%s1711_s13 + $0x50] sm:$0xff] %v1015_v7  ;;  %1063 = vst [vmem:[%s1711_s13 + $0xd0] sm:$0xff] %v1031_v8  ;;  %v1013_v13 = vsel %vm942_vm4, %v910_v57, %v981_v3  ;;  %v1029_v14 = vsel %vm958_vm5, %v926_v58, %v997_v4  ;;  %v927_v16 = vadd.f32 %v1687_v20, %v888_v60  ;;  %vm945_vm6 = vcmp.ge.f32.partialorder %v913_v9, 0.0 }
 0x117   : > { %1045 = vst [vmem:[%s1711_s13 + $0x40] sm:$0xff] %v1013_v13  ;;  %1061 = vst [vmem:[%s1711_s13 + $0xc0] sm:$0xff] %v1029_v14  ;;  %v984_v17 = vmul.f32 %v1691_v27, %v913_v9  ;;  %vm961_vm7 = vcmp.ge.f32.partialorder %v929_v10, 0.0  ;;  %v1000_v18 = vmul.f32 %v1691_v27, %v929_v10  ;;  %vm943_vm8 = vcmp.ge.f32.partialorder %v911_v15, 0.0 }
 0x118   : > { %v982_v21 = vmul.f32 %v1691_v27, %v911_v15  ;;  %vm959_vm9 = vcmp.ge.f32.partialorder %v927_v16, 0.0  ;;  %v998_v22 = vmul.f32 %v1691_v27, %v927_v16  ;;  %v877_v25 = vmul.f32 %v1307_v61, %v1680_v19 }
 0x119   : > { %v1016_v23 = vsel %vm945_vm6, %v913_v9, %v984_v17  ;;  %v1032_v24 = vsel %vm961_vm7, %v929_v10, %v1000_v18  ;;  %v893_v26 = vmul.f32 %v1323_v62, %v1680_v19  ;;  %v875_v30 = vmul.f32 %v1680_v19, %v678_v1 }
 0x11a   : > { %1048 = vst [vmem:[%s1711_s13 + $0x58] sm:$0xff] %v1016_v23  ;;  %1064 = vst [vmem:[%s1711_s13 + $0xd8] sm:$0xff] %v1032_v24  ;;  %v1014_v28 = vsel %vm943_vm8, %v911_v15, %v982_v21  ;;  %v1030_v29 = vsel %vm959_vm9, %v927_v16, %v998_v22  ;;  %v891_v31 = vmul.f32 %v1680_v19, %v742_v2 }
 0x11b   : > { %1046 = vst [vmem:[%s1711_s13 + $0x48] sm:$0xff] %v1014_v28  ;;  %1062 = vst [vmem:[%s1711_s13 + $0xc8] sm:$0xff] %v1030_v29  ;;  %v916_v32 = vadd.f32 %v1687_v20, %v877_v25  ;;  %v932_v33 = vadd.f32 %v1687_v20, %v893_v26  ;;  %v878_v34 = vmul.f32 %v1308_v5, %v1680_v19 }
 0x11c   : > { %v894_v35 = vmul.f32 %v1324_v6, %v1680_v19  ;;  %v914_v36 = vadd.f32 %v1687_v20, %v875_v30  ;;  %v930_v37 = vadd.f32 %v1687_v20, %v891_v31  ;;  %v876_v38 = vmul.f32 %v1680_v19, %v681_v11 }
 0x11d   : > { %v892_v39 = vmul.f32 %v1680_v19, %v745_v12  ;;  %vm948_vm10 = vcmp.ge.f32.partialorder %v916_v32, 0.0  ;;  %v987_v40 = vmul.f32 %v1691_v27, %v916_v32  ;;  %vm964_vm11 = vcmp.ge.f32.partialorder %v932_v33, 0.0 }
 0x11e   : > { %v1003_v41 = vmul.f32 %v1691_v27, %v932_v33  ;;  %vm946_vm12 = vcmp.ge.f32.partialorder %v914_v36, 0.0  ;;  %v985_v42 = vmul.f32 %v1691_v27, %v914_v36  ;;  %vm962_vm13 = vcmp.ge.f32.partialorder %v930_v37, 0.0 }
 0x11f   : > { %v1001_v43 = vmul.f32 %v1691_v27, %v930_v37  ;;  %v1019_v44 = vsel %vm948_vm10, %v916_v32, %v987_v40  ;;  %v917_v19 = vadd.f32 %v1687_v20, %v878_v34  ;;  %v933_v46 = vadd.f32 %v1687_v20, %v894_v35 }
 0x120   : > { %v1035_v45 = vsel %vm964_vm11, %v932_v33, %v1003_v41  ;;  %1051 = vst [vmem:[%s1711_s13 + $0x70] sm:$0xff] %v1019_v44  ;;  %v1017_v47 = vsel %vm946_vm12, %v914_v36, %v985_v42  ;;  %v915_v49 = vadd.f32 %v1687_v20, %v876_v38  ;;  %v931_v50 = vadd.f32 %v1687_v20, %v892_v39 }
 0x121   : > { %1067 = vst [vmem:[%s1711_s13 + $0xf0] sm:$0xff] %v1035_v45  ;;  %v1033_v48 = vsel %vm962_vm13, %v930_v37, %v1001_v43  ;;  %1049 = vst [vmem:[%s1711_s13 + $0x60] sm:$0xff] %v1017_v47  ;;  %vm949_vm14 = vcmp.ge.f32.partialorder %v917_v19, 0.0  ;;  %v988_v51 = vmul.f32 %v1691_v27, %v917_v19  ;;  %vm965_vm15 = vcmp.ge.f32.partialorder %v933_v46, 0.0 }
 0x122   : > { %1065 = vst [vmem:[%s1711_s13 + $0xe0] sm:$0xff] %v1033_v48  ;;  %v1004_v52 = vmul.f32 %v1691_v27, %v933_v46  ;;  %vm947_vm0 = vcmp.ge.f32.partialorder %v915_v49, 0.0  ;;  %v986_v20 = vmul.f32 %v1691_v27, %v915_v49  ;;  %vm963_vm1 = vcmp.ge.f32.partialorder %v931_v50, 0.0 }
 0x123   : > { %v1002_v53 = vmul.f32 %v1691_v27, %v931_v50  ;;  %v1020_v54 = vsel %vm949_vm14, %v917_v19, %v988_v51 }
 0x124   : > { %v1036_v55 = vsel %vm965_vm15, %v933_v46, %v1004_v52  ;;  %1052 = vst [vmem:[%s1711_s13 + $0x78] sm:$0xff] %v1020_v54  ;;  %v1018_v56 = vsel %vm947_vm0, %v915_v49, %v986_v20 }
 0x125   : > { %1068 = vst [vmem:[%s1711_s13 + $0xf8] sm:$0xff] %v1036_v55  ;;  %v1034_v57 = vsel %vm963_vm1, %v931_v50, %v1002_v53  ;;  %1050 = vst [vmem:[%s1711_s13 + $0x68] sm:$0xff] %v1018_v56 }
 0x126   : > { %1066 = vst [vmem:[%s1711_s13 + $0xe8] sm:$0xff] %v1034_v57 }
 0x127   : > { %1437 = shalt.err (!%p1434_p7)
}
 0x128   : > { %s1438_s9 = scalar_lea.hbm %s1826_s17, 4096  ;;  %s1442_s21 = scalar_lea.hbm %s1895_s5, 16384 }
 0x129   : > { %p1439_p9 = scmp.ne.s32.totalorder %s1826_s17, %s1438_s9  ;;  %p1443_p12 = scmp.lt.u32.totalorder %s1826_s17, %s1895_s5 }
 0x12a   : > { %p1444_p13 = scmp.lt.u32.totalorder %s1442_s21, %s1438_s9  ;;  %p1446_p1 = scmp.lt.u32.totalorder %s1438_s9, %s1826_s17 }
 0x12b   : > { %p1440_p10 = pnand %p1439_p9, %p1605_p3 }
 0x12c   : > { %p1445_p0 = por %p1444_p13, %p1443_p12 }
 0x12d   : > { %p1441_p11 = pneg %p1440_p10 }
 0x12e   : > { %p1447_p2 = por %p1446_p1, %p1445_p0 }
 0x130   : > { %p1448_p4 = pnand %p1447_p2, %p1441_p11 }
 0x132   : > { %1451 = shalt.err (!%p1448_p4)
}
 0x133   : > { %s1521_s16 = smov 128   ;;  %s1522_s27 = smov 256  }
 0x134   : > { %s1523_s30 = smov 8  }
 0x135   : > { %1332 = dma.vmem_to_hbm [thread:$0]  (%p1605_p3), %s1830_s14, 4096, %s1826_s17, %s1838_s26, %s1521_s16, %s1522_s27, %s1523_s30  }
 0x136 PF: > { %p1338_p5 = scmp.ge.s32.totalorder %s1518_s25, 2  ;;  %s1100_s8 = sand.u32 1, %s1490_s18  }
 0x137   : > { %s1101_s10 = scalar_lea.sflag [#allocation4], %s1100_s8 }
 0x138   : > { %p1335_p6 = pnand %p1338_p5, %p1614_p8 }
 0x13a   : > { %1485 = dma.done.wait (!%p1335_p6), %s1101_s10, 4096  }
 0x13b   : > { %1487 = vsyncadd (!%p1335_p6), %s1101_s10, 4294963200  ;;  %s18_s25 = sadd.s32 1, %s1518_s25   ;;  %s1898_s18 = smov %s1494_s19 }
 0x13c   : > { %p15_p7 = scmp.ge.s32.totalorder %s18_s25, 6   ;;  %s1899_s19 = smov %s1498_s20 }
 0x13d   : > { %s1900_s20 = smov %s1623_s11  ;;  %s1901_s21 = smov %s1510_s23 }
 0x13e   : > { %s1902_s22 = smov %s1514_s24  ;;  %s1903_s23 = smov %s1906_s28 }
 0x13f   : > { %s1904_s24 = smov %s1910_s29  ;;  %17 = sbr.rel (!%p15_p7) target bundleno = 5 (0x5), region = 95 }
 0x146   :  { %1106 = vsyncpa [#allocation4], 1 }
 0x147   :  { %1108 = vsyncpa [#allocation4 + $0x1], 1 }

</bundles_post_ra>
